<compile_context>
chip_gen: v6e
topology: v6e:2x2x1
jax: 0.10.0
libtpu: 0.0.40
codegen_flags: <defaults>
</compile_context>

<pallas_src>
import functools

import jax
import jax.numpy as jnp
from jax.experimental import pallas as pl
from jax.experimental.pallas import tpu as pltpu

LN_EPS = 1e-5
HEAD_PAD = 128  # lane-dense padded width of the fused [classifier | regressor] head


def predictor_kernel(x_ref, w1_ref, b1_ref, w2_ref, b2_ref, wh_ref, bh_ref,
                     out_ref):
    """One row-tile of the full forward pass (eval mode).

    x_ref:   (TM, D)       bf16 input rows
    w1_ref:  (D, H)  bf16  b1_ref: (1, H)  f32
    w2_ref:  (H, H)  bf16  b2_ref: (1, H)  f32
    wh_ref:  (H, 128) bf16 fused [classifier | regressor | zero-pad] head,
                           with LayerNorm affine pre-folded in
    bh_ref:  (1, 128) f32  fused head bias
    out_ref: (TM, 128) f32 fused head output
    """
    x = x_ref[...]

    # fc: Linear -> ReLU -> Linear -> ReLU  (bf16 MXU operands, f32 accumulate)
    h = jnp.dot(x, w1_ref[...], preferred_element_type=jnp.float32) + b1_ref[...]
    h = jnp.maximum(h, 0.0)
    h = jnp.dot(h.astype(w2_ref.dtype), w2_ref[...],
                preferred_element_type=jnp.float32) + b2_ref[...]
    h = jnp.maximum(h, 0.0)

    # dropout: identity at inference
    # TODO(synk): training-mode dropout (RNG mask) not implemented in-kernel.

    # LayerNorm over the last dim (f32; affine folded into the head weights)
    mean = jnp.mean(h, axis=-1, keepdims=True)
    c = h - mean
    var = jnp.mean(c * c, axis=-1, keepdims=True)
    hn = c * jax.lax.rsqrt(var + LN_EPS)

    # fused classifier + regressor head, lane-padded to 128
    out = jnp.dot(hn.astype(wh_ref.dtype), wh_ref[...],
                  preferred_element_type=jnp.float32) + bh_ref[...]
    out_ref[...] = out.astype(out_ref.dtype)


def _round_up(n, m):
    return (n + m - 1) // m * m


@functools.partial(jax.jit, static_argnames=("tile_m",))
def meaning_predictor_forward(x, params, *, tile_m=512):
    """x: (B, T, D) float32 -> (pred_class (B,T,C), pred_state (B,T,1))."""
    B, T, D = x.shape
    N = B * T
    H = params["w1"].shape[1]
    C = params["wc"].shape[1]
    assert C + 1 <= HEAD_PAD

    # Effective row tile: a multiple of 8, never larger than the padded N.
    tile = min(tile_m, _round_up(N, 8))
    n_pad = _round_up(N, tile)

    # ---- parameter prep (tiny; done outside the kernel) -------------------
    gamma = params["gamma"].astype(jnp.float32)          # (1, H)
    beta = params["beta"].astype(jnp.float32)            # (1, H)
    wc = params["wc"].astype(jnp.float32)                # (H, C)
    wr = params["wr"].astype(jnp.float32)                # (H, 1)
    # Fold LayerNorm affine into the heads:
    #   (hn*gamma + beta) @ W + b == hn @ (gamma^T * W) + (beta @ W + b)
    wc_f = wc * gamma[0][:, None]
    wr_f = wr * gamma[0][:, None]
    bc_f = params["bc"].astype(jnp.float32) + beta @ wc   # (1, C)
    br_f = params["br"].astype(jnp.float32) + beta @ wr   # (1, 1)
    # Fuse classifier | regressor and zero-pad to a lane-dense 128-wide head.
    wh = jnp.zeros((H, HEAD_PAD), jnp.float32)
    wh = wh.at[:, :C].set(wc_f).at[:, C:C + 1].set(wr_f)
    bh = jnp.zeros((1, HEAD_PAD), jnp.float32)
    bh = bh.at[:, :C].set(bc_f).at[:, C:C + 1].set(br_f)

    # bf16 MXU operands (accumulation stays f32 in-kernel).
    x2d = x.reshape(N, D)
    if n_pad != N:
        x2d = jnp.pad(x2d, ((0, n_pad - N), (0, 0)))
    x2d = x2d.astype(jnp.bfloat16)
    w1 = params["w1"].astype(jnp.bfloat16)
    w2 = params["w2"].astype(jnp.bfloat16)
    wh = wh.astype(jnp.bfloat16)
    b1 = params["b1"].astype(jnp.float32)
    b2 = params["b2"].astype(jnp.float32)

    grid = (n_pad // tile,)

    def full_spec(shape):
        return pl.BlockSpec(shape, lambda i: (0, 0))

    flops = 2 * n_pad * (D * H + H * H + H * HEAD_PAD)
    bytes_accessed = (x2d.size * 2 + n_pad * HEAD_PAD * 4
                      + (w1.size + w2.size + wh.size) * 2
                      + (b1.size + b2.size + bh.size) * 4)
    cost = pl.CostEstimate(flops=flops, transcendentals=n_pad,
                           bytes_accessed=bytes_accessed)

    out = pl.pallas_call(
        predictor_kernel,
        out_shape=jax.ShapeDtypeStruct((n_pad, HEAD_PAD), jnp.float32),
        grid_spec=pltpu.PrefetchScalarGridSpec(
            num_scalar_prefetch=0,
            grid=grid,
            in_specs=[
                pl.BlockSpec((tile, D), lambda i: (i, 0)),        # x rows
                full_spec((D, H)), full_spec((1, H)),             # w1, b1
                full_spec((H, H)), full_spec((1, H)),             # w2, b2
                full_spec((H, HEAD_PAD)), full_spec((1, HEAD_PAD)),  # fused head
            ],
            out_specs=pl.BlockSpec((tile, HEAD_PAD), lambda i: (i, 0)),
        ),
        compiler_params=pltpu.CompilerParams(
            dimension_semantics=("parallel",),
            vmem_limit_bytes=32 * 1024 * 1024),
        cost_estimate=cost,
    )(x2d, w1, b1, w2, b2, wh, bh)

    out = out[:N].astype(x.dtype)
    pred_class = out[:, :C].reshape(B, T, C)
    pred_state = out[:, C:C + 1].reshape(B, T, 1)
    return pred_class, pred_state


def init_params(key, hidden_dim, output_dim=128, num_classes=10):
    """Deterministic synthetic init (weights stored as (in, out))."""
    ks = jax.random.split(key, 8)
    s = 0.05
    return {
        "w1": s * jax.random.normal(ks[0], (hidden_dim, output_dim), jnp.float32),
        "b1": s * jax.random.normal(ks[1], (1, output_dim), jnp.float32),
        "w2": s * jax.random.normal(ks[2], (output_dim, output_dim), jnp.float32),
        "b2": s * jax.random.normal(ks[3], (1, output_dim), jnp.float32),
        # LayerNorm defaults: weight=1, bias=0 (PyTorch default init)
        "gamma": jnp.ones((1, output_dim), jnp.float32),
        "beta": jnp.zeros((1, output_dim), jnp.float32),
        "wc": s * jax.random.normal(ks[4], (output_dim, num_classes), jnp.float32),
        "bc": s * jax.random.normal(ks[5], (1, num_classes), jnp.float32),
        "wr": s * jax.random.normal(ks[6], (output_dim, 1), jnp.float32),
        "br": s * jax.random.normal(ks[7], (1, 1), jnp.float32),
    }


def reference_forward(x, params, compute_dtype=jnp.float32):
    """Pure-JAX reference of the PyTorch forward (eval mode).

    compute_dtype controls the rounding applied to matmul operands so the
    reference can mimic the kernel's bf16 MXU path (accumulation in f32).
    """
    def mm(a, w):
        return jnp.dot(a.astype(compute_dtype).astype(jnp.float32),
                       w.astype(compute_dtype).astype(jnp.float32))

    h = jnp.maximum(mm(x, params["w1"]) + params["b1"][0], 0.0)
    h = jnp.maximum(mm(h, params["w2"]) + params["b2"][0], 0.0)
    mean = jnp.mean(h, axis=-1, keepdims=True)
    var = jnp.mean((h - mean) ** 2, axis=-1, keepdims=True)
    hn = (h - mean) / jnp.sqrt(var + LN_EPS)
    hn = hn * params["gamma"][0] + params["beta"][0]
    cls = mm(hn, params["wc"]) + params["bc"][0]
    reg = mm(hn, params["wr"]) + params["br"][0]
    return cls, reg


if __name__ == "__main__":
    B, T, hidden_dim = 2, 8, 32
    output_dim, num_classes = 128, 10

    key = jax.random.PRNGKey(0)
    kx, kp = jax.random.split(key)
    x = jax.random.normal(kx, (B, T, hidden_dim), jnp.float32)
    params = init_params(kp, hidden_dim, output_dim, num_classes)

    pred_class, pred_state = meaning_predictor_forward(x, params)
    jax.block_until_ready((pred_class, pred_state))

    assert pred_class.shape == (B, T, num_classes)
    assert pred_state.shape == (B, T, 1)

    # Tight check against a reference that rounds matmul operands to bf16
    # exactly like the kernel does (f32 accumulation).
    rc_bf, rs_bf = reference_forward(x, params, compute_dtype=jnp.bfloat16)
    assert jnp.allclose(pred_class, rc_bf, atol=5e-3, rtol=5e-3)
    assert jnp.allclose(pred_state, rs_bf, atol=5e-3, rtol=5e-3)

    # Looser sanity check against the exact f32 PyTorch-style forward
    # (difference comes purely from bf16 operand rounding).
    rc, rs = reference_forward(x, params, compute_dtype=jnp.float32)
    assert jnp.allclose(pred_class, rc, atol=1e-1, rtol=1e-1)
    assert jnp.allclose(pred_state, rs, atol=1e-1, rtol=1e-1)

    print("KERNEL_OK")
</pallas_src>

<mosaic_0001>
module attributes {stable_mosaic.version = 11 : i64} {
  func.func @predictor_kernel(%arg0: i32, %arg1: memref<16x32xbf16, #tpu.memory_space<vmem>>, %arg2: memref<32x128xbf16, #tpu.memory_space<vmem>>, %arg3: memref<1x128xf32, #tpu.memory_space<vmem>>, %arg4: memref<128x128xbf16, #tpu.memory_space<vmem>>, %arg5: memref<1x128xf32, #tpu.memory_space<vmem>>, %arg6: memref<128x128xbf16, #tpu.memory_space<vmem>>, %arg7: memref<1x128xf32, #tpu.memory_space<vmem>>, %arg8: memref<16x128xf32, #tpu.memory_space<vmem>>) attributes {dimension_semantics = [#tpu.dimension_semantics<parallel>], iteration_bounds = array<i64: 1>, scalar_prefetch = 0 : i64, scratch_operands = 0 : i64, tpu.core_type = #tpu.core_type<tc>, window_params = [{transform_indices = @transform_0, window_bounds = array<i64: 16, 32>}, {pipeline_mode = #tpu.pipeline_mode<synchronous>, transform_indices = @transform_1, window_bounds = array<i64: 32, 128>}, {pipeline_mode = #tpu.pipeline_mode<synchronous>, transform_indices = @transform_2, window_bounds = array<i64: 1, 128>}, {pipeline_mode = #tpu.pipeline_mode<synchronous>, transform_indices = @transform_3, window_bounds = array<i64: 128, 128>}, {pipeline_mode = #tpu.pipeline_mode<synchronous>, transform_indices = @transform_4, window_bounds = array<i64: 1, 128>}, {pipeline_mode = #tpu.pipeline_mode<synchronous>, transform_indices = @transform_5, window_bounds = array<i64: 128, 128>}, {pipeline_mode = #tpu.pipeline_mode<synchronous>, transform_indices = @transform_6, window_bounds = array<i64: 1, 128>}, {transform_indices = @transform_7, window_bounds = array<i64: 16, 128>}]} {
    %c0 = arith.constant 0 : index
    %c0_0 = arith.constant 0 : index
    %0 = vector.load %arg1[%c0, %c0_0] : memref<16x32xbf16, #tpu.memory_space<vmem>>, vector<16x32xbf16>
    %c0_1 = arith.constant 0 : index
    %c0_2 = arith.constant 0 : index
    %1 = vector.load %arg2[%c0_1, %c0_2] : memref<32x128xbf16, #tpu.memory_space<vmem>>, vector<32x128xbf16>
    %cst = arith.constant dense<0.000000e+00> : vector<16x128xf32>
    %2 = tpu.matmul %0, %1, %cst {dimension_numbers = #tpu.dot_dimension_numbers<[1], [0], [0], [1], [0, 0, 1, 1], [], []>} : vector<16x32xbf16>, vector<32x128xbf16>, vector<16x128xf32> -> vector<16x128xf32>
    %c0_3 = arith.constant 0 : index
    %c0_4 = arith.constant 0 : index
    %3 = vector.load %arg3[%c0_3, %c0_4] : memref<1x128xf32, #tpu.memory_space<vmem>>, vector<1x128xf32>
    %4 = vector.broadcast %3 : vector<1x128xf32> to vector<16x128xf32>
    %5 = arith.addf %2, %4 : vector<16x128xf32>
    %cst_5 = arith.constant 0.000000e+00 : f32
    %6 = vector.broadcast %cst_5 : f32 to vector<16x128xf32>
    %7 = arith.maximumf %5, %6 : vector<16x128xf32>
    %8 = arith.truncf %7 : vector<16x128xf32> to vector<16x128xbf16>
    %c0_6 = arith.constant 0 : index
    %c0_7 = arith.constant 0 : index
    %9 = vector.load %arg4[%c0_6, %c0_7] : memref<128x128xbf16, #tpu.memory_space<vmem>>, vector<128x128xbf16>
    %cst_8 = arith.constant dense<0.000000e+00> : vector<16x128xf32>
    %10 = tpu.matmul %8, %9, %cst_8 {dimension_numbers = #tpu.dot_dimension_numbers<[1], [0], [0], [1], [0, 0, 1, 1], [], []>} : vector<16x128xbf16>, vector<128x128xbf16>, vector<16x128xf32> -> vector<16x128xf32>
    %c0_9 = arith.constant 0 : index
    %c0_10 = arith.constant 0 : index
    %11 = vector.load %arg5[%c0_9, %c0_10] : memref<1x128xf32, #tpu.memory_space<vmem>>, vector<1x128xf32>
    %12 = vector.broadcast %11 : vector<1x128xf32> to vector<16x128xf32>
    %13 = arith.addf %10, %12 : vector<16x128xf32>
    %cst_11 = arith.constant 0.000000e+00 : f32
    %14 = vector.broadcast %cst_11 : f32 to vector<16x128xf32>
    %15 = arith.maximumf %13, %14 : vector<16x128xf32>
    %cst_12 = arith.constant dense<0.000000e+00> : vector<16xf32>
    %16 = vector.multi_reduction <add>, %15, %cst_12 [1] : vector<16x128xf32> to vector<16xf32>
    %17 = vector.shape_cast %16 : vector<16xf32> to vector<16x1xf32>
    %cst_13 = arith.constant 1.280000e+02 : f32
    %18 = vector.broadcast %cst_13 : f32 to vector<16x1xf32>
    %19 = arith.divf %17, %18 : vector<16x1xf32>
    %20 = vector.broadcast %19 : vector<16x1xf32> to vector<16x128xf32>
    %21 = arith.subf %15, %20 : vector<16x128xf32>
    %22 = arith.mulf %21, %21 : vector<16x128xf32>
    %cst_14 = arith.constant dense<0.000000e+00> : vector<16xf32>
    %23 = vector.multi_reduction <add>, %22, %cst_14 [1] : vector<16x128xf32> to vector<16xf32>
    %24 = vector.shape_cast %23 : vector<16xf32> to vector<16x1xf32>
    %cst_15 = arith.constant 1.280000e+02 : f32
    %25 = vector.broadcast %cst_15 : f32 to vector<16x1xf32>
    %26 = arith.divf %24, %25 : vector<16x1xf32>
    %cst_16 = arith.constant 9.99999974E-6 : f32
    %27 = vector.broadcast %cst_16 : f32 to vector<16x1xf32>
    %28 = arith.addf %26, %27 : vector<16x1xf32>
    %29 = math.rsqrt %28 : vector<16x1xf32>
    %30 = vector.broadcast %29 : vector<16x1xf32> to vector<16x128xf32>
    %31 = arith.mulf %21, %30 : vector<16x128xf32>
    %32 = arith.truncf %31 : vector<16x128xf32> to vector<16x128xbf16>
    %c0_17 = arith.constant 0 : index
    %c0_18 = arith.constant 0 : index
    %33 = vector.load %arg6[%c0_17, %c0_18] : memref<128x128xbf16, #tpu.memory_space<vmem>>, vector<128x128xbf16>
    %cst_19 = arith.constant dense<0.000000e+00> : vector<16x128xf32>
    %34 = tpu.matmul %32, %33, %cst_19 {dimension_numbers = #tpu.dot_dimension_numbers<[1], [0], [0], [1], [0, 0, 1, 1], [], []>} : vector<16x128xbf16>, vector<128x128xbf16>, vector<16x128xf32> -> vector<16x128xf32>
    %c0_20 = arith.constant 0 : index
    %c0_21 = arith.constant 0 : index
    %35 = vector.load %arg7[%c0_20, %c0_21] : memref<1x128xf32, #tpu.memory_space<vmem>>, vector<1x128xf32>
    %36 = vector.broadcast %35 : vector<1x128xf32> to vector<16x128xf32>
    %37 = arith.addf %34, %36 : vector<16x128xf32>
    %c0_22 = arith.constant 0 : index
    %c0_23 = arith.constant 0 : index
    %38 = vector.load %arg8[%c0_22, %c0_23] : memref<16x128xf32, #tpu.memory_space<vmem>>, vector<16x128xf32>
    tpu.vector_store %arg8[%c0_22, %c0_23], %37 {strides = array<i32>} : memref<16x128xf32, #tpu.memory_space<vmem>>, vector<16x128xf32>,
    return
  }
  func.func @transform_0(%arg0: i32) -> (i32, i32) {
    %c0_i32 = arith.constant 0 : i32
    %c0_i32_0 = arith.constant 0 : i32
    return %arg0, %c0_i32 : i32, i32
  }
  func.func @transform_1(%arg0: i32) -> (i32, i32) {
    %c0_i32 = arith.constant 0 : i32
    %c0_i32_0 = arith.constant 0 : i32
    %c0_i32_1 = arith.constant 0 : i32
    return %c0_i32, %c0_i32_0 : i32, i32
  }
  func.func @transform_2(%arg0: i32) -> (i32, i32) {
    %c0_i32 = arith.constant 0 : i32
    %c0_i32_0 = arith.constant 0 : i32
    %c0_i32_1 = arith.constant 0 : i32
    return %c0_i32, %c0_i32_0 : i32, i32
  }
  func.func @transform_3(%arg0: i32) -> (i32, i32) {
    %c0_i32 = arith.constant 0 : i32
    %c0_i32_0 = arith.constant 0 : i32
    %c0_i32_1 = arith.constant 0 : i32
    return %c0_i32, %c0_i32_0 : i32, i32
  }
  func.func @transform_4(%arg0: i32) -> (i32, i32) {
    %c0_i32 = arith.constant 0 : i32
    %c0_i32_0 = arith.constant 0 : i32
    %c0_i32_1 = arith.constant 0 : i32
    return %c0_i32, %c0_i32_0 : i32, i32
  }
  func.func @transform_5(%arg0: i32) -> (i32, i32) {
    %c0_i32 = arith.constant 0 : i32
    %c0_i32_0 = arith.constant 0 : i32
    %c0_i32_1 = arith.constant 0 : i32
    return %c0_i32, %c0_i32_0 : i32, i32
  }
  func.func @transform_6(%arg0: i32) -> (i32, i32) {
    %c0_i32 = arith.constant 0 : i32
    %c0_i32_0 = arith.constant 0 : i32
    %c0_i32_1 = arith.constant 0 : i32
    return %c0_i32, %c0_i32_0 : i32, i32
  }
  func.func @transform_7(%arg0: i32) -> (i32, i32) {
    %c0_i32 = arith.constant 0 : i32
    %c0_i32_0 = arith.constant 0 : i32
    return %arg0, %c0_i32 : i32, i32
  }
}

</mosaic_0001>

<bundles_post_ra>
// kernel: meaning_predictor_forward.1
= control target key start
LH: loop header
LB: loop body
LE: loop exit
PB: predicated region body
PF: predicated region fallthrough
CT: control target
= control target key end

     0   :  { %v478_v0 = vmov 0.0   ;;  %vm479_vm0 = vmmov 0   ;;  %vm57_vm1 = vcmask 261120   ;;  %s616_s1 = inlined_call_operand.vmem [shape: bf16[32,128], index: 1, kind: input, shape index: {}]   ;;  %s617_s3 = inlined_call_operand.vmem [shape: bf16[128,128], index: 3, kind: input, shape index: {}]   ;;  %s618_s0 = inlined_call_operand.vmem [shape: bf16[16,32], index: 0, kind: input, shape index: {}]   ;;  %s619_s2 = inlined_call_operand.vmem [shape: f32[1,128], index: 2, kind: input, shape index: {}]   ;;  %s620_s4 = inlined_call_operand.vmem [shape: f32[1,128], index: 4, kind: input, shape index: {}]   ;;  %s621_s5 = inlined_call_operand.vmem [shape: bf16[128,128], index: 5, kind: input, shape index: {}]   ;;  %s622_s6 = inlined_call_operand.vmem [shape: f32[1,128], index: 6, kind: input, shape index: {}]   ;;  %s623_s7 = inlined_call_operand.vmem [shape: f32[16,128], index: 7, kind: output, shape index: {}]  }
   0x1   :  { %405 = vmatprep.subr.bf16.mxu0 %v478_v0  ;;  %v455_v1 = vld [vmem:[%s616_s1 + $0x8] sm:$0xff]   ;;  %409 = vmatprep.mubr.msk.bf16.mxu0 %vm479_vm0, %v478_v0  ;;  %v456_v2 = vld [vmem:[%s616_s1] sm:$0xff]   ;;  %v458_v3 = vld [vmem:[%s617_s3 + $0x38] sm:$0xff]  }
   0x2   :  { %413 = vmatprep.subr.bf16.mxu1 %v478_v0  ;;  %429 = vmatprep.mubr.msk.bf16.mxu1 %vm479_vm0, %v478_v0  ;;  %v457_v4 = vld [vmem:[%s618_s0] sm:$0xff]   ;;  %v459_v5 = vld [vmem:[%s617_s3 + $0x30] sm:$0xff]   ;;  %v460_v6 = vld [vmem:[%s617_s3 + $0x28] sm:$0xff]  }
   0x3   :  { %406 = vmatpush3.bf16.msra.mxu0 %v455_v1  ;;  %414 = vmatpush3.bf16.msra.mxu1 %v458_v3  ;;  %v461_v7 = vld [vmem:[%s617_s3 + $0x20] sm:$0xff]   ;;  %v462_v8 = vld [vmem:[%s617_s3 + $0x18] sm:$0xff]   ;;  %v463_v9 = vld [vmem:[%s617_s3 + $0x10] sm:$0xff]  }
   0x4   :  { %407 = vmatprep.subr.bf16.mxu0 %v478_v0  ;;  %415 = vmatprep.subr.bf16.mxu1 %v478_v0  ;;  %v464_v10 = vld [vmem:[%s617_s3 + $0x8] sm:$0xff]   ;;  %v465_v11 = vld [vmem:[%s617_s3] sm:$0xff]   ;;  %v466_v31 = vld [vmem:[%s621_s5 + $0x38] sm:$0xff]  }
   0x5   :  { %v361_v12 = vld [vmem:[%s619_s2] ss:$0 sm:$0xff]  ;;  %v467_v32 = vld [vmem:[%s621_s5 + $0x30] sm:$0xff]   ;;  %v468_v41 = vld [vmem:[%s621_s5 + $0x28] sm:$0xff]  }
   0x6   :  { %v366_v22 = vld [vmem:[%s620_s4] ss:$0 sm:$0xff]  ;;  %v470_v43 = vld [vmem:[%s621_s5 + $0x18] sm:$0xff]   ;;  %v471_v44 = vld [vmem:[%s621_s5 + $0x10] sm:$0xff]  }
   0x7   :  { %408 = vmatpush3.bf16.msra.mxu0 %v456_v2  ;;  %416 = vmatpush3.bf16.msra.mxu1 %v459_v5  ;;  %v469_v42 = vld [vmem:[%s621_s5 + $0x20] sm:$0xff]   ;;  %v472_v45 = vld [vmem:[%s621_s5 + $0x8] sm:$0xff]  }
   0x8   :  { %433 = vmatprep.subr.bf16.mxu0 %v478_v0  ;;  %417 = vmatprep.subr.bf16.mxu1 %v478_v0  ;;  %v473_v46 = vld [vmem:[%s621_s5] sm:$0xff]  }
   0x9   :  { %v375_v58 = vld [vmem:[%s622_s6] ss:$0 sm:$0xff] }
   0xa   :  { %410 = vmatmul.mubr.msk.bf16.vlgmr.msra.gmra.mxu0 %vm57_vm1, %v457_v4 }
   0xb   :  { %449 = vmatprep.mubr.msk.bf16.mxu0 %vm479_vm0, %v478_v0  ;;  %418 = vmatpush3.bf16.msra.mxu1 %v460_v6 }
   0xc   :  { %419 = vmatprep.subr.bf16.mxu1 %v478_v0  ;;  %434 = vmatpush3.bf16.msra.mxu0 %v466_v31 }
   0xd   :  { %435 = vmatprep.subr.bf16.mxu0 %v478_v0 }
   0xf   :  { %420 = vmatpush3.bf16.msra.mxu1 %v461_v7 }
  0x10   :  { %421 = vmatprep.subr.bf16.mxu1 %v478_v0  ;;  %436 = vmatpush3.bf16.msra.mxu0 %v467_v32 }
  0x11   :  { %437 = vmatprep.subr.bf16.mxu0 %v478_v0 }
  0x13   :  { %422 = vmatpush3.bf16.msra.mxu1 %v462_v8 }
  0x14   :  { %423 = vmatprep.subr.bf16.mxu1 %v478_v0  ;;  %438 = vmatpush3.bf16.msra.mxu0 %v468_v41 }
  0x15   :  { %439 = vmatprep.subr.bf16.mxu0 %v478_v0 }
  0x17   :  { %424 = vmatpush3.bf16.msra.mxu1 %v463_v9 }
  0x18   :  { %425 = vmatprep.subr.bf16.mxu1 %v478_v0  ;;  %440 = vmatpush3.bf16.msra.mxu0 %v469_v42 }
  0x19   :  { %441 = vmatprep.subr.bf16.mxu0 %v478_v0 }
  0x1b   :  { %426 = vmatpush3.bf16.msra.mxu1 %v464_v10 }
  0x1c   :  { %427 = vmatprep.subr.bf16.mxu1 %v478_v0  ;;  %442 = vmatpush3.bf16.msra.mxu0 %v470_v43 }
  0x1d   :  { %443 = vmatprep.subr.bf16.mxu0 %v478_v0 }
  0x1f   :  { %428 = vmatpush3.bf16.msra.mxu1 %v465_v11 }
  0x20   :  { %444 = vmatpush3.bf16.msra.mxu0 %v471_v44 }
  0x21   :  { %445 = vmatprep.subr.bf16.mxu0 %v478_v0 }
  0x24   :  { %446 = vmatpush3.bf16.msra.mxu0 %v472_v45 }
  0x25   :  { %447 = vmatprep.subr.bf16.mxu0 %v478_v0 }
  0x28   :  { %448 = vmatpush3.bf16.msra.mxu0 %v473_v46 }
  0xca   :  { %v95_v13 = vpop.f32.mrf.mxu0 }
  0xcb   :  { %v96_v15 = vadd.f32 %v361_v12, %v95_v13 }
  0xcc   :  { %v411_v14 = vpop.f32.mrf.mxu0 }
  0xcd   :  { %v102_v19 = vmax.f32 %v96_v15, 0.0 }
  0xce   :  { %v98_v16 = vpop.f32.mrf.mxu0 }
  0xcf   :  { %v99_v17 = vadd.f32 %v361_v12, %v98_v16 }
  0xd0   :  { %v412_v18 = vpop.f32.mrf.mxu0 }
  0xd1   :  { %v103_v20 = vmax.f32 %v99_v17, 0.0 }
  0xd3   :  { %v104_v21 = vpack.c.bf16 %v103_v20, %v102_v19 }
  0xd5   :  { %430 = vmatmul.mubr.bf16.vlgmr.msra.gmra.mxu1 %v104_v21 }
 0x195   :  { %v210_v23 = vpop.f32.mrf.mxu1 }
 0x196   :  { %v211_v24 = vadd.f32 %v366_v22, %v210_v23 }
 0x197   :  { %v431_v25 = vpop.f32.mrf.mxu1 }
 0x198   :  { %v217_v26 = vmax.f32 %v211_v24, 0.0 }
 0x199   :  { %v213_v27 = vpop.f32.mrf.mxu1 }
 0x19a   :  { %v214_v28 = vadd.f32 %v366_v22, %v213_v27  ;;  %219 = vadd.xlane.f32.xlu0 %v217_v26 }
 0x19b   :  { %v432_v29 = vpop.f32.mrf.mxu1 }
 0x19c   :  { %v218_v30 = vmax.f32 %v214_v28, 0.0 }
 0x19e   :  { %221 = vadd.xlane.f32.xlu0 %v218_v30 }
 0x223   :  { %v220_v33 = vpop.xlane.xlu0 %219 }
 0x224   :  { %v224_v34 = vmul.f32 0.0078125, %v220_v33 }
 0x226   :  { %v226_v35 = vsub.f32 %v217_v26, %v224_v34 }
 0x227   :  { %v222_v36 = vpop.xlane.xlu0 %221 }
 0x228   :  { %v225_v37 = vmul.f32 0.0078125, %v222_v36  ;;  %v228_v38 = vmul.f32 %v226_v35, %v226_v35 }
 0x22a   :  { %v227_v39 = vsub.f32 %v218_v30, %v225_v37  ;;  %230 = vadd.xlane.f32.xlu1 %v228_v38 }
 0x22c   :  { %v229_v40 = vmul.f32 %v227_v39, %v227_v39 }
 0x22e   :  { %232 = vadd.xlane.f32.xlu1 %v229_v40 }
 0x2b3   :  { %v231_v47 = vpop.xlane.xlu1 %230 }
 0x2b4   :  { %v234_v48 = vmul.f32 0.0078125, %v231_v47 }
 0x2b6   :  { %v236_v49 = vadd.f32 1e-05, %v234_v48 }
 0x2b7   :  { %v233_v50 = vpop.xlane.xlu1 %232 }
 0x2b8   :  { %v235_v51 = vmul.f32 0.0078125, %v233_v50  ;;  %474 = vrsqrt.f32 %v236_v49 }
 0x2ba   :  { %v237_v52 = vadd.f32 1e-05, %v235_v51 }
 0x2bc   :  { %476 = vrsqrt.f32 %v237_v52 }
 0x2c5   :  { %v475_v53 = vpop.eup %474 }
 0x2c6   :  { %v240_v55 = vmul.f32 %v475_v53, %v226_v35 }
 0x2c9   :  { %v477_v54 = vpop.eup %476 }
 0x2ca   :  { %v241_v56 = vmul.f32 %v477_v54, %v227_v39 }
 0x2cc   :  { %v242_v57 = vpack.c.bf16 %v241_v56, %v240_v55 }
 0x2ce   :  { %450 = vmatmul.mubr.bf16.vlgmr.msra.gmra.mxu0 %v242_v57 }
 0x38e   :  { %v348_v59 = vpop.f32.mrf.mxu0 }
 0x38f   :  { %v349_v60 = vadd.f32 %v375_v58, %v348_v59 }
 0x390   :  { %v451_v61 = vpop.f32.mrf.mxu0 }
 0x391   :  { %355 = vst [vmem:[%s623_s7] sm:$0xff] %v349_v60 }
 0x392   :  { %v351_v62 = vpop.f32.mrf.mxu0 }
 0x393   :  { %v352_v63 = vadd.f32 %v375_v58, %v351_v62 }
 0x394   :  { %v452_v0 = vpop.f32.mrf.mxu0 }
 0x395   :  { %356 = vst [vmem:[%s623_s7 + $0x8] sm:$0xff] %v352_v63 }

</bundles_post_ra>
